<compile_context>
chip_gen: v7x
topology: tpu7x:2x2x1
jax: 0.10.0
libtpu: 0.0.40
codegen_flags: <defaults>
</compile_context>

<pallas_src>
import functools
import math

import jax
import jax.numpy as jnp
import numpy as np
from jax.experimental import pallas as pl
from jax.experimental.pallas import tpu as pltpu

NUM_KERNELS = 6          # module default -> 7 branches


# --------------------------------------------------------------------------- #
# Parameter construction / folding (host side)
# --------------------------------------------------------------------------- #
def branch_specs(num_kernels=NUM_KERNELS):
    """Mirrors the nn.ModuleList construction order of Inception_Block_V2."""
    specs = []
    for i in range(num_kernels // 2):
        specs.append(("w", 2 * i + 3))   # Conv2d kernel_size=[1, 2i+3], pad [0, i+1]
        specs.append(("h", 2 * i + 3))   # Conv2d kernel_size=[2i+3, 1], pad [i+1, 0]
    specs.append(("w", 1))               # Conv2d kernel_size=1
    return specs


def fold_params(raw_weights, raw_biases, branches):
    """Fold per-branch conv taps into per-shift (Cout, Cin) blocks.

    Returns (shifts, w_packed, b_packed):
      shifts   : tuple of (dh, dw), length S (13 for the default 7 branches)
      w_packed : (S, Cout, Cin), already scaled by 1/len(branches)  (the mean)
      b_packed : (Cout, 1), mean of the branch biases
    """
    nb = len(branches)
    acc = {}
    for j, (axis, k) in enumerate(branches):
        w = raw_weights[j]                      # (Cout, Cin, kh, kw)
        half = (k - 1) // 2
        for t in range(k):
            if axis == "w":
                key, tap = (0, t - half), w[:, :, 0, t]
            else:
                key, tap = (t - half, 0), w[:, :, t, 0]
            acc[key] = acc[key] + tap if key in acc else tap
    shifts = tuple(sorted(acc.keys()))
    w_packed = jnp.stack([acc[s] for s in shifts], axis=0) / nb     # (S, Cout, Cin)
    b_packed = (sum(raw_biases) / nb).reshape(-1, 1)                # (Cout, 1)
    return shifts, w_packed.astype(jnp.float32), b_packed.astype(jnp.float32)


# --------------------------------------------------------------------------- #
# Kernel
# --------------------------------------------------------------------------- #
def inception_kernel(x_ref, halo_ref, mask_ref, w_ref, b_ref, o_ref, *,
                     shifts, pad, tile_rows, width):
    """One (Cout, TH*W) output tile.

    x_ref    : (Cin, TH*W)       main row block (padded rows [t*TH, (t+1)*TH))
    halo_ref : (Cin, 2*pad*W)    bottom halo   (padded rows [(t+1)*TH, ... + 2*pad))
    mask_ref : (2*pad+1, TH*W)   column-boundary keep masks, row index = dw + pad
    w_ref    : (S, Cout, Cin)    folded per-shift weights (1/7 mean folded in)
    b_ref    : (Cout, 1)         folded bias (f32)
    o_ref    : (Cout, TH*W)      lane-dense output tile
    """
    th, w = tile_rows, width
    thw = th * w

    # Tile rows + 2*pad-row bottom halo, as one lane-flattened window.
    window = jnp.concatenate([x_ref[...], halo_ref[...]], axis=1)   # (Cin, THW + 2*pad*W)
    masks = mask_ref[...]                                           # (2*pad+1, THW)

    # Per-shift accumulate: no (S*Cin, THW) rhs buffer, no concat copy; the f32
    # accumulator is the only large temporary besides one slab at a time.
    acc = None
    for i, (dh, dw) in enumerate(shifts):                           # 13 static shifts
        off = (pad + dh) * w + dw
        slab = window[:, off:off + thw]                             # (Cin, THW) static lane slice
        if dw != 0:
            # Zero the values that leaked across a row boundary (conv zero-pad on W).
            # select (not multiply): robust to inf/NaN activations.
            keep = masks[dw + pad:dw + pad + 1, :] != 0.0           # (1, THW)
            slab = jnp.where(keep, slab, 0.0)
        part = jnp.dot(w_ref[i], slab, preferred_element_type=jnp.float32)
        acc = part if acc is None else acc + part
    acc = acc + b_ref[...]                                          # f32 bias add
    o_ref[...] = acc.astype(o_ref.dtype)


# --------------------------------------------------------------------------- #
# Tiling / VMEM helpers
# --------------------------------------------------------------------------- #
def _lcm(a, b):
    return a * b // math.gcd(a, b)


def _vmem_budget():
    """Scoped-VMEM limit to request from Mosaic (conservative v7x fallback)."""
    cap = 64 << 20                                # v7x physical; v5e/v6e have 128 MiB
    try:
        cap = int(getattr(pltpu.get_tpu_info(), "vmem_capacity_bytes", cap))
    except Exception:
        pass
    return int(min(max(cap - (16 << 20), 32 << 20), 100 << 20))


def _vmem_estimate(th, w, cin, cout, s, pad, itemsize):
    """Rough per-grid-step VMEM working set (pipeline buffers + kernel temps)."""
    thw, halo_w = th * w, 2 * pad * w
    x_in = 2 * cin * thw * itemsize              # main activation block, double-buffered
    halo = 2 * cin * halo_w * itemsize           # halo block, double-buffered
    msk = 2 * (2 * pad + 1) * thw * 4            # boundary masks (grid-invariant)
    wts = 2 * s * cout * cin * itemsize          # packed weights (grid-invariant)
    bias = 2 * cout * 4
    out = 2 * cout * thw * itemsize              # output block, double-buffered
    window = cin * (thw + halo_w) * itemsize     # in-kernel concatenated window
    slab = 2 * cin * thw * itemsize              # shifted-slab temporaries
    accb = cout * thw * 4                        # f32 accumulator
    return x_in + halo + msk + wts + bias + out + window + slab + accb


def _pick_row_tile(h, w, cin, cout, s, pad, itemsize, row_tile, target_bytes):
    # TH must be a multiple of `unit` so that TH*W is lane-aligned (%128 == 0).
    # (For W coprime with 128 this forces 128-row units; the VMEM loop below then
    #  simply stops at `unit` - see perf-review note about padding W instead.)
    unit = _lcm(8, 128 // math.gcd(w, 128))
    max_th = -(-h // unit) * unit                # smallest multiple of unit covering h
    if row_tile is not None:
        return max(unit, min(max_th, (row_tile // unit) * unit))
    # Target large tiles (per-grid-step overhead ~0.35us dominates small tiles on a
    # mem-bound kernel), then shrink until the working set fits the VMEM budget so
    # double-buffering survives even on v7x's 64 MiB.
    th = min(max_th, max(unit, ((16384 // w) // unit) * unit))
    while th > unit and _vmem_estimate(th, w, cin, cout, s, pad, itemsize) > target_bytes:
        th -= unit
    return th


# --------------------------------------------------------------------------- #
# Wrapper
# --------------------------------------------------------------------------- #
def inception_block_v2(x, shifts, w_packed, b_packed, *, row_tile=None):
    """x: (N, Cin, H, W) NCHW.  Returns (N, Cout, H, W) NCHW."""
    n, cin, h, w = x.shape
    s, cout, cin_w = w_packed.shape
    assert cin_w == cin and len(shifts) == s
    pad = max(max(abs(dh), abs(dw)) for dh, dw in shifts)
    itemsize = jnp.dtype(x.dtype).itemsize

    vmem_limit = _vmem_budget()
    th = _pick_row_tile(h, w, cin, cout, s, pad, itemsize, row_tile, vmem_limit // 2)
    ht = -(-h // th)                       # number of row tiles
    thw = th * w
    halo_w = 2 * pad * w
    assert thw % 128 == 0

    # Rows only are zero-padded: `pad` rows on top (each tile's window starts `pad`
    # rows early in padded coordinates) plus enough at the bottom for the last halo.
    hfull = ht * th + 2 * pad
    xp = jnp.pad(x, ((0, 0), (0, 0), (pad, hfull - h - pad), (0, 0)))

    # Main row blocks: (N, Cin, ht*TH*W) — one lane-dense (Cin, TH*W) block per tile.
    xmain = xp[:, :, :ht * th, :].reshape(n, cin, ht * thw)

    # Exact-size bottom halo (2*pad rows) per tile, so the kernel never re-fetches a
    # whole neighbouring block just to use 2*pad rows of it.
    row_idx = np.arange(ht)[:, None] * th + th + np.arange(2 * pad)[None, :]
    halo = jnp.take(xp, jnp.asarray(row_idx.reshape(-1), dtype=jnp.int32), axis=2)
    halo = halo.reshape(n, cin, ht, 2 * pad, w).transpose(0, 2, 1, 3, 4)
    halo = halo.reshape(n, ht, cin, halo_w)

    # Column-boundary keep masks (row dw+pad holds the mask for column shift dw),
    # built once host-side and passed as a tiny grid-invariant input (a numpy table
    # inside the kernel would be a captured constant, which Pallas rejects).
    col = np.arange(thw, dtype=np.int64) % w
    mask_np = np.zeros((2 * pad + 1, thw), np.float32)
    for dw in range(-pad, pad + 1):
        mask_np[dw + pad] = ((col + dw >= 0) & (col + dw < w)).astype(np.float32)
    masks = jnp.asarray(mask_np)

    wv = w_packed.astype(x.dtype)          # compute dtype follows the activations
    bv = b_packed.astype(jnp.float32)      # bias stays on the f32 accumulator

    kernel = functools.partial(inception_kernel, shifts=tuple(shifts), pad=pad,
                               tile_rows=th, width=w)
    # TODO(synk): for very large Cout (> ~256) add a parallel Cout grid axis so the
    # resident weight block and the output tile shrink; not needed at demo sizes.
    out = pl.pallas_call(
        kernel,
        out_shape=jax.ShapeDtypeStruct((n, cout, ht * thw), x.dtype),
        grid_spec=pltpu.PrefetchScalarGridSpec(
            num_scalar_prefetch=0,
            grid=(n, ht),
            in_specs=[
                pl.BlockSpec((None, cin, thw), lambda b, t: (b, 0, t)),
                pl.BlockSpec((None, None, cin, halo_w), lambda b, t: (b, t, 0, 0)),
                pl.BlockSpec((2 * pad + 1, thw), lambda b, t: (0, 0)),    # invariant
                pl.BlockSpec((s, cout, cin), lambda b, t: (0, 0, 0)),     # invariant
                pl.BlockSpec((cout, 1), lambda b, t: (0, 0)),             # invariant
            ],
            out_specs=pl.BlockSpec((None, cout, thw), lambda b, t: (b, 0, t)),
        ),
        compiler_params=pltpu.CompilerParams(
            dimension_semantics=("parallel", "parallel"),
            vmem_limit_bytes=vmem_limit),
    )(xmain, halo, masks, wv, bv)
    return out[:, :, :h * w].reshape(n, cout, h, w)


# --------------------------------------------------------------------------- #
# Reference + demo
# --------------------------------------------------------------------------- #
def init_params(key, in_channels, out_channels, branches):
    """kaiming_normal_(fan_out, relu) weights, zero biases — as in the module."""
    raw_w, raw_b = [], []
    for (axis, k) in branches:
        key, sub = jax.random.split(key)
        kh, kw = (1, k) if axis == "w" else (k, 1)
        fan_out = out_channels * kh * kw
        std = math.sqrt(2.0 / fan_out)
        raw_w.append(jax.random.normal(
            sub, (out_channels, in_channels, kh, kw), jnp.float32) * std)
        raw_b.append(jnp.zeros((out_channels,), jnp.float32))
    return raw_w, raw_b


def reference_forward(x, raw_w, raw_b, branches):
    """Pure-JAX replica of the PyTorch forward (stack + mean)."""
    outs = []
    for j, (axis, k) in enumerate(branches):
        kh, kw = (1, k) if axis == "w" else (k, 1)
        o = jax.lax.conv_general_dilated(
            x, raw_w[j], window_strides=(1, 1),
            padding=[((kh - 1) // 2, (kh - 1) // 2),
                     ((kw - 1) // 2, (kw - 1) // 2)],
            dimension_numbers=("NCHW", "OIHW", "NCHW"))
        outs.append(o + raw_b[j][None, :, None, None])
    return jnp.mean(jnp.stack(outs, axis=-1), axis=-1)


if __name__ == "__main__":
    key = jax.random.PRNGKey(0)
    k_x, k_w = jax.random.split(key)

    N, Cin, Cout, H, W = 2, 4, 8, 16, 16
    x = jax.random.normal(k_x, (N, Cin, H, W), jnp.float32)

    branches = branch_specs(NUM_KERNELS)
    raw_w, raw_b = init_params(k_w, Cin, Cout, branches)
    shifts, w_packed, b_packed = fold_params(raw_w, raw_b, branches)

    ref = reference_forward(x, raw_w, raw_b, branches)

    # f32 path with two row tiles per image (exercises the halo input): grid (2, 2)
    out = inception_block_v2(x, shifts, w_packed, b_packed, row_tile=8)
    out = jax.block_until_ready(out)
    assert out.shape == (N, Cout, H, W)
    err = float(jnp.max(jnp.abs(out - ref)))
    assert jnp.allclose(out, ref, rtol=1e-4, atol=1e-4), f"f32 max err {err}"

    # bf16 compute path (recommended on v6e/v7x), default (single) row tile.
    out16 = inception_block_v2(x.astype(jnp.bfloat16), shifts, w_packed, b_packed)
    out16 = jax.block_until_ready(out16).astype(jnp.float32)
    err16 = float(jnp.max(jnp.abs(out16 - ref)))
    assert jnp.allclose(out16, ref, rtol=5e-2, atol=5e-2), f"bf16 max err {err16}"

    print("KERNEL_OK")
</pallas_src>

<mosaic_0001>
module attributes {stable_mosaic.version = 11 : i64} {
  func.func @inception_kernel(%arg0: i32, %arg1: i32, %arg2: memref<1x4x128xf32, #tpu.memory_space<vmem>>, %arg3: memref<1x1x4x96xf32, #tpu.memory_space<vmem>>, %arg4: memref<7x128xf32, #tpu.memory_space<vmem>>, %arg5: memref<13x8x4xf32, #tpu.memory_space<vmem>>, %arg6: memref<8x1xf32, #tpu.memory_space<vmem>>, %arg7: memref<1x8x128xf32, #tpu.memory_space<vmem>>) attributes {dimension_semantics = [#tpu.dimension_semantics<parallel>, #tpu.dimension_semantics<parallel>], iteration_bounds = array<i64: 2, 2>, scalar_prefetch = 0 : i64, scratch_operands = 0 : i64, tpu.core_type = #tpu.core_type<tc>, window_params = [{transform_indices = @transform_0, window_bounds = array<i64: 1, 4, 128>}, {transform_indices = @transform_1, window_bounds = array<i64: 1, 1, 4, 96>}, {pipeline_mode = #tpu.pipeline_mode<synchronous>, transform_indices = @transform_2, window_bounds = array<i64: 7, 128>}, {pipeline_mode = #tpu.pipeline_mode<synchronous>, transform_indices = @transform_3, window_bounds = array<i64: 13, 8, 4>}, {pipeline_mode = #tpu.pipeline_mode<synchronous>, transform_indices = @transform_4, window_bounds = array<i64: 8, 1>}, {transform_indices = @transform_5, window_bounds = array<i64: 1, 8, 128>}]} {
    %c0 = arith.constant 0 : index
    %c0_0 = arith.constant 0 : index
    %c0_1 = arith.constant 0 : index
    %0 = vector.load %arg2[%c0, %c0_0, %c0_1] : memref<1x4x128xf32, #tpu.memory_space<vmem>>, vector<1x4x128xf32>
    %1 = vector.shape_cast %0 : vector<1x4x128xf32> to vector<4x128xf32>
    %c0_2 = arith.constant 0 : index
    %c0_3 = arith.constant 0 : index
    %c0_4 = arith.constant 0 : index
    %c0_5 = arith.constant 0 : index
    %2 = vector.load %arg3[%c0_2, %c0_3, %c0_4, %c0_5] : memref<1x1x4x96xf32, #tpu.memory_space<vmem>>, vector<1x1x4x96xf32>
    %3 = vector.shape_cast %2 : vector<1x1x4x96xf32> to vector<4x96xf32>
    %4 = tpu.concatenate %1, %3 in 1 : vector<4x128xf32>, vector<4x96xf32> -> vector<4x224xf32>
    %c0_6 = arith.constant 0 : index
    %c0_7 = arith.constant 0 : index
    %5 = vector.load %arg4[%c0_6, %c0_7] : memref<7x128xf32, #tpu.memory_space<vmem>>, vector<7x128xf32>
    %6 = vector.extract_strided_slice %4 {offsets = [0, 0], sizes = [4, 128], strides = [1, 1]} : vector<4x224xf32> to vector<4x128xf32>
    %c0_8 = arith.constant 0 : index
    %c0_9 = arith.constant 0 : index
    %c0_10 = arith.constant 0 : index
    %7 = vector.load %arg5[%c0_8, %c0_9, %c0_10] : memref<13x8x4xf32, #tpu.memory_space<vmem>>, vector<1x8x4xf32>
    %8 = vector.shape_cast %7 : vector<1x8x4xf32> to vector<8x4xf32>
    %cst = arith.constant dense<0.000000e+00> : vector<8x128xf32>
    %9 = tpu.matmul %8, %6, %cst {dimension_numbers = #tpu.dot_dimension_numbers<[1], [0], [0], [1], [0, 0, 1, 1], [], []>} : vector<8x4xf32>, vector<4x128xf32>, vector<8x128xf32> -> vector<8x128xf32>
    %10 = vector.extract_strided_slice %4 {offsets = [0, 16], sizes = [4, 128], strides = [1, 1]} : vector<4x224xf32> to vector<4x128xf32>
    %c1 = arith.constant 1 : index
    %c0_11 = arith.constant 0 : index
    %c0_12 = arith.constant 0 : index
    %11 = vector.load %arg5[%c1, %c0_11, %c0_12] : memref<13x8x4xf32, #tpu.memory_space<vmem>>, vector<1x8x4xf32>
    %12 = vector.shape_cast %11 : vector<1x8x4xf32> to vector<8x4xf32>
    %cst_13 = arith.constant dense<0.000000e+00> : vector<8x128xf32>
    %13 = tpu.matmul %12, %10, %cst_13 {dimension_numbers = #tpu.dot_dimension_numbers<[1], [0], [0], [1], [0, 0, 1, 1], [], []>} : vector<8x4xf32>, vector<4x128xf32>, vector<8x128xf32> -> vector<8x128xf32>
    %14 = arith.addf %9, %13 : vector<8x128xf32>
    %15 = vector.extract_strided_slice %4 {offsets = [0, 32], sizes = [4, 128], strides = [1, 1]} : vector<4x224xf32> to vector<4x128xf32>
    %c2 = arith.constant 2 : index
    %c0_14 = arith.constant 0 : index
    %c0_15 = arith.constant 0 : index
    %16 = vector.load %arg5[%c2, %c0_14, %c0_15] : memref<13x8x4xf32, #tpu.memory_space<vmem>>, vector<1x8x4xf32>
    %17 = vector.shape_cast %16 : vector<1x8x4xf32> to vector<8x4xf32>
    %cst_16 = arith.constant dense<0.000000e+00> : vector<8x128xf32>
    %18 = tpu.matmul %17, %15, %cst_16 {dimension_numbers = #tpu.dot_dimension_numbers<[1], [0], [0], [1], [0, 0, 1, 1], [], []>} : vector<8x4xf32>, vector<4x128xf32>, vector<8x128xf32> -> vector<8x128xf32>
    %19 = arith.addf %14, %18 : vector<8x128xf32>
    %20 = vector.extract_strided_slice %4 {offsets = [0, 45], sizes = [4, 128], strides = [1, 1]} : vector<4x224xf32> to vector<4x128xf32>
    %21 = vector.extract_strided_slice %5 {offsets = [0, 0], sizes = [1, 128], strides = [1, 1]} : vector<7x128xf32> to vector<1x128xf32>
    %cst_17 = arith.constant 0.000000e+00 : f32
    %22 = vector.broadcast %cst_17 : f32 to vector<1x128xf32>
    %23 = arith.cmpf one, %21, %22 : vector<1x128xf32>
    %cst_18 = arith.constant 0.000000e+00 : f32
    %24 = vector.shape_cast %23 : vector<1x128xi1> to vector<1x128xi1>
    %25 = vector.broadcast %24 : vector<1x128xi1> to vector<4x128xi1>
    %26 = vector.broadcast %cst_18 : f32 to vector<4x128xf32>
    %27 = arith.select %25, %20, %26 : vector<4x128xi1>, vector<4x128xf32>
    %c3 = arith.constant 3 : index
    %c0_19 = arith.constant 0 : index
    %c0_20 = arith.constant 0 : index
    %28 = vector.load %arg5[%c3, %c0_19, %c0_20] : memref<13x8x4xf32, #tpu.memory_space<vmem>>, vector<1x8x4xf32>
    %29 = vector.shape_cast %28 : vector<1x8x4xf32> to vector<8x4xf32>
    %cst_21 = arith.constant dense<0.000000e+00> : vector<8x128xf32>
    %30 = tpu.matmul %29, %27, %cst_21 {dimension_numbers = #tpu.dot_dimension_numbers<[1], [0], [0], [1], [0, 0, 1, 1], [], []>} : vector<8x4xf32>, vector<4x128xf32>, vector<8x128xf32> -> vector<8x128xf32>
    %31 = arith.addf %19, %30 : vector<8x128xf32>
    %32 = vector.extract_strided_slice %4 {offsets = [0, 46], sizes = [4, 128], strides = [1, 1]} : vector<4x224xf32> to vector<4x128xf32>
    %33 = vector.extract_strided_slice %5 {offsets = [1, 0], sizes = [1, 128], strides = [1, 1]} : vector<7x128xf32> to vector<1x128xf32>
    %cst_22 = arith.constant 0.000000e+00 : f32
    %34 = vector.broadcast %cst_22 : f32 to vector<1x128xf32>
    %35 = arith.cmpf one, %33, %34 : vector<1x128xf32>
    %cst_23 = arith.constant 0.000000e+00 : f32
    %36 = vector.shape_cast %35 : vector<1x128xi1> to vector<1x128xi1>
    %37 = vector.broadcast %36 : vector<1x128xi1> to vector<4x128xi1>
    %38 = vector.broadcast %cst_23 : f32 to vector<4x128xf32>
    %39 = arith.select %37, %32, %38 : vector<4x128xi1>, vector<4x128xf32>
    %c4 = arith.constant 4 : index
    %c0_24 = arith.constant 0 : index
    %c0_25 = arith.constant 0 : index
    %40 = vector.load %arg5[%c4, %c0_24, %c0_25] : memref<13x8x4xf32, #tpu.memory_space<vmem>>, vector<1x8x4xf32>
    %41 = vector.shape_cast %40 : vector<1x8x4xf32> to vector<8x4xf32>
    %cst_26 = arith.constant dense<0.000000e+00> : vector<8x128xf32>
    %42 = tpu.matmul %41, %39, %cst_26 {dimension_numbers = #tpu.dot_dimension_numbers<[1], [0], [0], [1], [0, 0, 1, 1], [], []>} : vector<8x4xf32>, vector<4x128xf32>, vector<8x128xf32> -> vector<8x128xf32>
    %43 = arith.addf %31, %42 : vector<8x128xf32>
    %44 = vector.extract_strided_slice %4 {offsets = [0, 47], sizes = [4, 128], strides = [1, 1]} : vector<4x224xf32> to vector<4x128xf32>
    %45 = vector.extract_strided_slice %5 {offsets = [2, 0], sizes = [1, 128], strides = [1, 1]} : vector<7x128xf32> to vector<1x128xf32>
    %cst_27 = arith.constant 0.000000e+00 : f32
    %46 = vector.broadcast %cst_27 : f32 to vector<1x128xf32>
    %47 = arith.cmpf one, %45, %46 : vector<1x128xf32>
    %cst_28 = arith.constant 0.000000e+00 : f32
    %48 = vector.shape_cast %47 : vector<1x128xi1> to vector<1x128xi1>
    %49 = vector.broadcast %48 : vector<1x128xi1> to vector<4x128xi1>
    %50 = vector.broadcast %cst_28 : f32 to vector<4x128xf32>
    %51 = arith.select %49, %44, %50 : vector<4x128xi1>, vector<4x128xf32>
    %c5 = arith.constant 5 : index
    %c0_29 = arith.constant 0 : index
    %c0_30 = arith.constant 0 : index
    %52 = vector.load %arg5[%c5, %c0_29, %c0_30] : memref<13x8x4xf32, #tpu.memory_space<vmem>>, vector<1x8x4xf32>
    %53 = vector.shape_cast %52 : vector<1x8x4xf32> to vector<8x4xf32>
    %cst_31 = arith.constant dense<0.000000e+00> : vector<8x128xf32>
    %54 = tpu.matmul %53, %51, %cst_31 {dimension_numbers = #tpu.dot_dimension_numbers<[1], [0], [0], [1], [0, 0, 1, 1], [], []>} : vector<8x4xf32>, vector<4x128xf32>, vector<8x128xf32> -> vector<8x128xf32>
    %55 = arith.addf %43, %54 : vector<8x128xf32>
    %56 = vector.extract_strided_slice %4 {offsets = [0, 48], sizes = [4, 128], strides = [1, 1]} : vector<4x224xf32> to vector<4x128xf32>
    %c6 = arith.constant 6 : index
    %c0_32 = arith.constant 0 : index
    %c0_33 = arith.constant 0 : index
    %57 = vector.load %arg5[%c6, %c0_32, %c0_33] : memref<13x8x4xf32, #tpu.memory_space<vmem>>, vector<1x8x4xf32>
    %58 = vector.shape_cast %57 : vector<1x8x4xf32> to vector<8x4xf32>
    %cst_34 = arith.constant dense<0.000000e+00> : vector<8x128xf32>
    %59 = tpu.matmul %58, %56, %cst_34 {dimension_numbers = #tpu.dot_dimension_numbers<[1], [0], [0], [1], [0, 0, 1, 1], [], []>} : vector<8x4xf32>, vector<4x128xf32>, vector<8x128xf32> -> vector<8x128xf32>
    %60 = arith.addf %55, %59 : vector<8x128xf32>
    %61 = vector.extract_strided_slice %4 {offsets = [0, 49], sizes = [4, 128], strides = [1, 1]} : vector<4x224xf32> to vector<4x128xf32>
    %62 = vector.extract_strided_slice %5 {offsets = [4, 0], sizes = [1, 128], strides = [1, 1]} : vector<7x128xf32> to vector<1x128xf32>
    %cst_35 = arith.constant 0.000000e+00 : f32
    %63 = vector.broadcast %cst_35 : f32 to vector<1x128xf32>
    %64 = arith.cmpf one, %62, %63 : vector<1x128xf32>
    %cst_36 = arith.constant 0.000000e+00 : f32
    %65 = vector.shape_cast %64 : vector<1x128xi1> to vector<1x128xi1>
    %66 = vector.broadcast %65 : vector<1x128xi1> to vector<4x128xi1>
    %67 = vector.broadcast %cst_36 : f32 to vector<4x128xf32>
    %68 = arith.select %66, %61, %67 : vector<4x128xi1>, vector<4x128xf32>
    %c7 = arith.constant 7 : index
    %c0_37 = arith.constant 0 : index
    %c0_38 = arith.constant 0 : index
    %69 = vector.load %arg5[%c7, %c0_37, %c0_38] : memref<13x8x4xf32, #tpu.memory_space<vmem>>, vector<1x8x4xf32>
    %70 = vector.shape_cast %69 : vector<1x8x4xf32> to vector<8x4xf32>
    %cst_39 = arith.constant dense<0.000000e+00> : vector<8x128xf32>
    %71 = tpu.matmul %70, %68, %cst_39 {dimension_numbers = #tpu.dot_dimension_numbers<[1], [0], [0], [1], [0, 0, 1, 1], [], []>} : vector<8x4xf32>, vector<4x128xf32>, vector<8x128xf32> -> vector<8x128xf32>
    %72 = arith.addf %60, %71 : vector<8x128xf32>
    %73 = vector.extract_strided_slice %4 {offsets = [0, 50], sizes = [4, 128], strides = [1, 1]} : vector<4x224xf32> to vector<4x128xf32>
    %74 = vector.extract_strided_slice %5 {offsets = [5, 0], sizes = [1, 128], strides = [1, 1]} : vector<7x128xf32> to vector<1x128xf32>
    %cst_40 = arith.constant 0.000000e+00 : f32
    %75 = vector.broadcast %cst_40 : f32 to vector<1x128xf32>
    %76 = arith.cmpf one, %74, %75 : vector<1x128xf32>
    %cst_41 = arith.constant 0.000000e+00 : f32
    %77 = vector.shape_cast %76 : vector<1x128xi1> to vector<1x128xi1>
    %78 = vector.broadcast %77 : vector<1x128xi1> to vector<4x128xi1>
    %79 = vector.broadcast %cst_41 : f32 to vector<4x128xf32>
    %80 = arith.select %78, %73, %79 : vector<4x128xi1>, vector<4x128xf32>
    %c8 = arith.constant 8 : index
    %c0_42 = arith.constant 0 : index
    %c0_43 = arith.constant 0 : index
    %81 = vector.load %arg5[%c8, %c0_42, %c0_43] : memref<13x8x4xf32, #tpu.memory_space<vmem>>, vector<1x8x4xf32>
    %82 = vector.shape_cast %81 : vector<1x8x4xf32> to vector<8x4xf32>
    %cst_44 = arith.constant dense<0.000000e+00> : vector<8x128xf32>
    %83 = tpu.matmul %82, %80, %cst_44 {dimension_numbers = #tpu.dot_dimension_numbers<[1], [0], [0], [1], [0, 0, 1, 1], [], []>} : vector<8x4xf32>, vector<4x128xf32>, vector<8x128xf32> -> vector<8x128xf32>
    %84 = arith.addf %72, %83 : vector<8x128xf32>
    %85 = vector.extract_strided_slice %4 {offsets = [0, 51], sizes = [4, 128], strides = [1, 1]} : vector<4x224xf32> to vector<4x128xf32>
    %86 = vector.extract_strided_slice %5 {offsets = [6, 0], sizes = [1, 128], strides = [1, 1]} : vector<7x128xf32> to vector<1x128xf32>
    %cst_45 = arith.constant 0.000000e+00 : f32
    %87 = vector.broadcast %cst_45 : f32 to vector<1x128xf32>
    %88 = arith.cmpf one, %86, %87 : vector<1x128xf32>
    %cst_46 = arith.constant 0.000000e+00 : f32
    %89 = vector.shape_cast %88 : vector<1x128xi1> to vector<1x128xi1>
    %90 = vector.broadcast %89 : vector<1x128xi1> to vector<4x128xi1>
    %91 = vector.broadcast %cst_46 : f32 to vector<4x128xf32>
    %92 = arith.select %90, %85, %91 : vector<4x128xi1>, vector<4x128xf32>
    %c9 = arith.constant 9 : index
    %c0_47 = arith.constant 0 : index
    %c0_48 = arith.constant 0 : index
    %93 = vector.load %arg5[%c9, %c0_47, %c0_48] : memref<13x8x4xf32, #tpu.memory_space<vmem>>, vector<1x8x4xf32>
    %94 = vector.shape_cast %93 : vector<1x8x4xf32> to vector<8x4xf32>
    %cst_49 = arith.constant dense<0.000000e+00> : vector<8x128xf32>
    %95 = tpu.matmul %94, %92, %cst_49 {dimension_numbers = #tpu.dot_dimension_numbers<[1], [0], [0], [1], [0, 0, 1, 1], [], []>} : vector<8x4xf32>, vector<4x128xf32>, vector<8x128xf32> -> vector<8x128xf32>
    %96 = arith.addf %84, %95 : vector<8x128xf32>
    %97 = vector.extract_strided_slice %4 {offsets = [0, 64], sizes = [4, 128], strides = [1, 1]} : vector<4x224xf32> to vector<4x128xf32>
    %c10 = arith.constant 10 : index
    %c0_50 = arith.constant 0 : index
    %c0_51 = arith.constant 0 : index
    %98 = vector.load %arg5[%c10, %c0_50, %c0_51] : memref<13x8x4xf32, #tpu.memory_space<vmem>>, vector<1x8x4xf32>
    %99 = vector.shape_cast %98 : vector<1x8x4xf32> to vector<8x4xf32>
    %cst_52 = arith.constant dense<0.000000e+00> : vector<8x128xf32>
    %100 = tpu.matmul %99, %97, %cst_52 {dimension_numbers = #tpu.dot_dimension_numbers<[1], [0], [0], [1], [0, 0, 1, 1], [], []>} : vector<8x4xf32>, vector<4x128xf32>, vector<8x128xf32> -> vector<8x128xf32>
    %101 = arith.addf %96, %100 : vector<8x128xf32>
    %102 = vector.extract_strided_slice %4 {offsets = [0, 80], sizes = [4, 128], strides = [1, 1]} : vector<4x224xf32> to vector<4x128xf32>
    %c11 = arith.constant 11 : index
    %c0_53 = arith.constant 0 : index
    %c0_54 = arith.constant 0 : index
    %103 = vector.load %arg5[%c11, %c0_53, %c0_54] : memref<13x8x4xf32, #tpu.memory_space<vmem>>, vector<1x8x4xf32>
    %104 = vector.shape_cast %103 : vector<1x8x4xf32> to vector<8x4xf32>
    %cst_55 = arith.constant dense<0.000000e+00> : vector<8x128xf32>
    %105 = tpu.matmul %104, %102, %cst_55 {dimension_numbers = #tpu.dot_dimension_numbers<[1], [0], [0], [1], [0, 0, 1, 1], [], []>} : vector<8x4xf32>, vector<4x128xf32>, vector<8x128xf32> -> vector<8x128xf32>
    %106 = arith.addf %101, %105 : vector<8x128xf32>
    %107 = vector.extract_strided_slice %4 {offsets = [0, 96], sizes = [4, 128], strides = [1, 1]} : vector<4x224xf32> to vector<4x128xf32>
    %c12 = arith.constant 12 : index
    %c0_56 = arith.constant 0 : index
    %c0_57 = arith.constant 0 : index
    %108 = vector.load %arg5[%c12, %c0_56, %c0_57] : memref<13x8x4xf32, #tpu.memory_space<vmem>>, vector<1x8x4xf32>
    %109 = vector.shape_cast %108 : vector<1x8x4xf32> to vector<8x4xf32>
    %cst_58 = arith.constant dense<0.000000e+00> : vector<8x128xf32>
    %110 = tpu.matmul %109, %107, %cst_58 {dimension_numbers = #tpu.dot_dimension_numbers<[1], [0], [0], [1], [0, 0, 1, 1], [], []>} : vector<8x4xf32>, vector<4x128xf32>, vector<8x128xf32> -> vector<8x128xf32>
    %111 = arith.addf %106, %110 : vector<8x128xf32>
    %c0_59 = arith.constant 0 : index
    %c0_60 = arith.constant 0 : index
    %112 = vector.load %arg6[%c0_59, %c0_60] : memref<8x1xf32, #tpu.memory_space<vmem>>, vector<8x1xf32>
    %113 = vector.broadcast %112 : vector<8x1xf32> to vector<8x128xf32>
    %114 = arith.addf %111, %113 : vector<8x128xf32>
    %c0_61 = arith.constant 0 : index
    %c0_62 = arith.constant 0 : index
    %c0_63 = arith.constant 0 : index
    %115 = vector.load %arg7[%c0_61, %c0_62, %c0_63] : memref<1x8x128xf32, #tpu.memory_space<vmem>>, vector<1x8x128xf32>
    %116 = vector.shape_cast %115 : vector<1x8x128xf32> to vector<8x128xf32>
    %117 = vector.shape_cast %114 : vector<8x128xf32> to vector<1x8x128xf32>
    tpu.vector_store %arg7[%c0_61, %c0_62, %c0_63], %117 {strides = array<i32>} : memref<1x8x128xf32, #tpu.memory_space<vmem>>, vector<1x8x128xf32>,
    return
  }
  func.func @transform_0(%arg0: i32, %arg1: i32) -> (i32, i32, i32) {
    %c0_i32 = arith.constant 0 : i32
    %c0_i32_0 = arith.constant 0 : i32
    return %arg0, %c0_i32, %arg1 : i32, i32, i32
  }
  func.func @transform_1(%arg0: i32, %arg1: i32) -> (i32, i32, i32, i32) {
    %c0_i32 = arith.constant 0 : i32
    %c0_i32_0 = arith.constant 0 : i32
    %c0_i32_1 = arith.constant 0 : i32
    return %arg0, %arg1, %c0_i32, %c0_i32_0 : i32, i32, i32, i32
  }
  func.func @transform_2(%arg0: i32, %arg1: i32) -> (i32, i32) {
    %c0_i32 = arith.constant 0 : i32
    %c0_i32_0 = arith.constant 0 : i32
    %c0_i32_1 = arith.constant 0 : i32
    return %c0_i32, %c0_i32_0 : i32, i32
  }
  func.func @transform_3(%arg0: i32, %arg1: i32) -> (i32, i32, i32) {
    %c0_i32 = arith.constant 0 : i32
    %c0_i32_0 = arith.constant 0 : i32
    %c0_i32_1 = arith.constant 0 : i32
    %c0_i32_2 = arith.constant 0 : i32
    return %c0_i32, %c0_i32_0, %c0_i32_1 : i32, i32, i32
  }
  func.func @transform_4(%arg0: i32, %arg1: i32) -> (i32, i32) {
    %c0_i32 = arith.constant 0 : i32
    %c0_i32_0 = arith.constant 0 : i32
    %c0_i32_1 = arith.constant 0 : i32
    return %c0_i32, %c0_i32_0 : i32, i32
  }
  func.func @transform_5(%arg0: i32, %arg1: i32) -> (i32, i32, i32) {
    %c0_i32 = arith.constant 0 : i32
    %c0_i32_0 = arith.constant 0 : i32
    return %arg0, %c0_i32, %arg1 : i32, i32, i32
  }
}

</mosaic_0001>

<bundles_post_ra>
// kernel: tpu_custom_call.1
= control target key start
LH: loop header
LB: loop body
LE: loop exit
PB: predicated region body
PF: predicated region fallthrough
CT: control target
= control target key end

     0   :  { %10 = vsyncpa [#allocation3], 0  ;;  %s2178_s0 = inlined_call_operand.vmem [shape: f32[2,4,256], index: 0, kind: input, shape index: {}]   ;;  %s2179_s1 = inlined_call_operand.vmem [shape: f32[2,2,4,96], index: 1, kind: input, shape index: {}]   ;;  %s2180_s2 = inlined_call_operand.vmem [shape: f32[7,128], index: 2, kind: input, shape index: {}]   ;;  %s2181_s3 = inlined_call_operand.vmem [shape: f32[13,8,4], index: 3, kind: input, shape index: {}]   ;;  %s2182_s4 = inlined_call_operand.vmem [shape: f32[8,1], index: 4, kind: input, shape index: {}]   ;;  %s2183_s5 = inlined_call_operand.hbm [shape: f32[2,8,256], index: 5, kind: output, shape index: {}]  }
   0x1   :  { %12 = vsyncpa [#allocation3 + $0x1], 0  ;;  %s1912_s18 = smov 0   ;;  %s1914_s19 = smov 0  }
   0x2   :  { %s1916_s20 = smov 0   ;;  %s1918_s21 = smov 0  }
   0x3   :  { %s1920_s22 = smov 0   ;;  %s1922_s23 = smov 0  }
   0x4   :  { %s1924_s24 = smov 0   ;;  %s1926_s25 = smov 0  }
   0x5 LB: > { %2187 = sst [smem:[#allocation5_spill]] %s1860_s24  ;;  %s1539_s26 = sadd.s32 4294967295, %s1864_s25   ;;  %s1864_s25 = sphi %s1926_s25, %s18_s25   ;;  %s1860_s24 = sphi %s1924_s24, %s2194_s24   ;;  %s1856_s23 = sphi %s1922_s23, %s2199_s23   ;;  %s1852_s22 = sphi %s1920_s22, %s2192_s22   ;;  %s1848_s21 = sphi %s1918_s21, %s2198_s21   ;;  %s1844_s20 = sphi %s1916_s20, %s2197_s20   ;;  %s1840_s19 = sphi %s1914_s19, %s2196_s19   ;;  %s1836_s18 = sphi %s1912_s18, %s2195_s18  }
   0x6   : > { %s1540_s27 = sadd.s32 4294967294, %s1864_s25   ;;  %s27_s28 = sadd.s32 1, %s1856_s23 }
   0x7   : > { %p28_p0 = scmp.ge.s32.totalorder %s27_s28, 2  ;;  %s30_s29 = sadd.s32 1, %s1860_s24 }
   0x8   : > { %p168_p1 = scmp.ne.s32.totalorder %s1844_s20, %s1840_s19  ;;  %p169_p2 = scmp.eq.s32.totalorder %s1539_s26, 3 }
   0x9   : > { %s2201_s28 = smov (%p28_p0, %s27_s28), 0  ;;  %s2203_s29 = smov (!%p28_p0, %s30_s29), %s1860_s24 }
   0xa   : > { %2188 = sst [smem:[#allocation6_spill]] %s2201_s28  ;;  %s154_s30 = ssub.s32 %s1856_s23, %s2201_s28 }
   0xb   : > { %p1963_p3 = por %p169_p2, %p168_p1  ;;  %p32_p4 = scmp.ge.s32.totalorder %s2203_s29, 2 }
   0xc   : > { %p174_p5 = scmp.ne.s32.totalorder %s1840_s19, %s1836_s18  ;;  %p175_p6 = scmp.eq.s32.totalorder %s1540_s27, 3 }
   0xd   : > { %p1543_p7 = scmp.ge.s32.totalorder %s1864_s25, 1  ;;  %s2205_s29 = smov (%p32_p4, %s2203_s29), 0 }
   0xe   : > { %2190 = sst [smem:[#allocation7_spill]] %s2205_s29  ;;  %p1972_p8 = por %p175_p6, %p174_p5 }
   0xf   : > { %p224_p9 = scmp.lt.s32.totalorder %s1864_s25, 5  ;;  %s153_s8 = ssub.s32 %s1860_s24, %s2205_s29 }
  0x10   : > { %s158_s9 = sadd.s32 1, %s1844_s20  ;;  %s155_s10 = sor.u32 %s154_s30, %s153_s8 }
  0x11   : > { %p225_p10 = pnand %p1543_p7, %p224_p9  ;;  %p156_p11 = scmp.eq.s32.totalorder %s155_s10, 0 }
  0x12   : > { %p263_p12 = scmp.lt.s32.totalorder (!%p225_p10), %s1852_s22, 1  ;;  %p265_p13 = scmp.lt.s32.totalorder (!%p225_p10), %s1848_s21, 1  ;;  %v1866_v0 = vmov (!%p225_p10), 0.0   ;;  %vm1867_vm0 = vmmov (!%p225_p10), 0   ;;  %v1868_v1 = vmov (!%p225_p10), 0   ;;  %v282_v3 = vld [vmem:[%s2181_s3] sm:$0xff] (!%p225_p10)  ;;  %v531_v6 = vlaneseq (!%p225_p10) }
  0x13   : > { %s1981_s11 = scalar_select %p156_p11, %s1844_s20, %s158_s9  }
  0x14   : > { %228 = sbr.rel (%p225_p10) target bundleno = 425 (0x1a9), region = 40  ;;  %1618 = vmatprep.subr.mxu0 (!%p225_p10), %v1866_v0  ;;  %1623 = vmatprep.subr.mxu1 (!%p225_p10), %v1866_v0  ;;  %s1869_s28 = smov (!%p225_p10), 96   ;;  %vm297_vm1 = vcmask (!%p225_p10), 1043456   ;;  %vm293_vm2 = vcmask (!%p225_p10), 31744   ;;  %v1419_v5 = vld [vmem:[%s2182_s4] sm:$0xff] (!%p225_p10)  ;;  %v2013_v8 = vshrl.u32 (!%p225_p10), %v531_v6, 7 }
  0x15   : > { %1620 = vmatprep.mubr.msk.f32.mxu0 (!%p225_p10), %vm1867_vm0, %v1866_v0  ;;  %1625 = vmatprep.mubr.msk.f32.mxu1 (!%p225_p10), %vm1867_vm0, %v1866_v0  ;;  %s1870_s24 = smov (!%p225_p10), 112   ;;  %s1871_s29 = smov (!%p225_p10), 83   ;;  %v281_v7 = vld [vmem:[%s2180_s2] sm:$0x7f] (!%p225_p10)  ;;  %vm291_vm4 = vcmask (!%p225_p10), 916480   ;;  %vm451_vm5 = vcmask (!%p225_p10), 785408  }
  0x16   : > { %1769 = vset.pattern.permute.xlu0 (!%p225_p10), %v1868_v1  ;;  %s1879_s17 = smov (!%p225_p10), 48   ;;  %s1880_s26 = smov (!%p225_p10), 32   ;;  %vm529_vm3 = vcmp.ne.f32.partialorder (!%p225_p10), %v281_v7, 0.0  ;;  %v533_v9 = vsub.s32 (!%p225_p10), 0, %v2013_v8  ;;  %v625_v14 = vsub.s32 (!%p225_p10), 1, %v2013_v8  ;;  %v1549_v17 = vld [vmem:[%s2181_s3 + $0x8] sm:$0xff] (!%p225_p10) }
  0x17   : > { %v2016_v12 = vsel (!%p225_p10), %vm529_vm3, 1, %v1868_v1  ;;  %vm540_vm6 = vcmask (!%p225_p10), 678912   ;;  %v717_v21 = vsub.s32 (!%p225_p10), 2, %v2013_v8  ;;  %v1554_v24 = vld [vmem:[%s2181_s3 + $0x10] sm:$0xff] (!%p225_p10)  ;;  %v1557_v26 = vld [vmem:[%s2181_s3 + $0x18] sm:$0xff] (!%p225_p10)  ;;  %vm632_vm8 = vcmask (!%p225_p10), 670720  }
  0x18   : > { %v534_v13 = vrot.slane (!%p225_p10), %v2016_v12, %v533_v9  ;;  %v626_v20 = vrot.slane (!%p225_p10), %v2016_v12, %v625_v14  ;;  %v1560_v32 = vld [vmem:[%s2181_s3 + $0x20] sm:$0xff] (!%p225_p10)  ;;  %vm724_vm10 = vcmask (!%p225_p10), 662528   ;;  %v893_v34 = vsub.s32 (!%p225_p10), 4, %v2013_v8  ;;  %v1563_v38 = vld [vmem:[%s2181_s3 + $0x28] sm:$0xff] (!%p225_p10)  ;;  %v1566_v44 = vld [vmem:[%s2181_s3 + $0x30] sm:$0xff] (!%p225_p10) }
  0x19   : > { %v718_v28 = vrot.slane (!%p225_p10), %v2016_v12, %v717_v21  ;;  %vm813_vm12 = vcmask (!%p225_p10), 654336   ;;  %v985_v41 = vsub.s32 (!%p225_p10), 5, %v2013_v8  ;;  %vm900_vm13 = vcmask (!%p225_p10), 646144   ;;  %v1569_v51 = vld [vmem:[%s2181_s3 + $0x38] sm:$0xff] (!%p225_p10)  ;;  %v1572_v57 = vld [vmem:[%s2181_s3 + $0x40] sm:$0xff] (!%p225_p10)  ;;  %v1575_v62 = vld [vmem:[%s2181_s3 + $0x48] sm:$0xff] (!%p225_p10) }
  0x1a   : > { %vm535_vm7 = vcmp.eq.s32.totalorder (!%p225_p10), %v534_v13, 1  ;;  %vm627_vm9 = vcmp.eq.s32.totalorder (!%p225_p10), %v626_v20, 1  ;;  %v894_v40 = vrot.slane (!%p225_p10), %v2016_v12, %v893_v34  ;;  %v1077_v47 = vsub.s32 (!%p225_p10), 6, %v2013_v8  ;;  %v1581_v7 = vld [vmem:[%s2181_s3 + $0x58] sm:$0xff] (!%p225_p10) }
  0x1b   : > { %s264_s12 = scalar_select %p263_p12, %s1852_s22, 1  ;;  %vm719_vm11 = vcmp.eq.s32.totalorder %v718_v28, 1  ;;  %v986_v46 = vrot.slane %v2016_v12, %v985_v41  ;;  %vm992_vm15 = vcmask 637952  }
  0x1c   : > { %s266_s13 = scalar_select %p265_p13, %s1848_s21, 1  ;;  %vm895_vm14 = vcmp.eq.s32.totalorder %v894_v40, 1  ;;  %v1078_v53 = vrot.slane %v2016_v12, %v1077_v47 }
  0x1d   : > { %s1545_s14 = sshll.u32 %s264_s12, 1  ;;  %s1872_s12 = smov 82   ;;  %vm987_vm3 = vcmp.eq.s32.totalorder %v986_v46, 1 }
  0x1e   : > { %s268_s15 = sadd.s32 %s1545_s14, %s266_s13  ;;  %s1873_s13 = smov 81  }
  0x1f   : > { %s1546_s16 = sshll.u32 %s268_s15, 2  ;;  %s1874_s14 = smov 80  }
  0x20   : > { %s270_s27 = scalar_lea.vmem %s2178_s0, %s1546_s16  ;;  %s278_s9 = scalar_lea.vmem %s2179_s1, %s1546_s16 }
  0x21   : > { %v279_v2 = vld [vmem:[%s270_s27] sm:$0xf]  ;;  %s1875_s15 = smov 79   ;;  %s1876_s16 = smov 78  }
  0x22   : > { %447 = vrot.lane.b32.xlu1 %v279_v2, %s1869_s28  ;;  %287 = vrot.lane.b32.xlu0 %v279_v2, %s1870_s24  ;;  %v280_v4 = vld [vmem:[%s278_s9] sm:$0xf]  ;;  %s1588_s27 = sshll.u32 %s1852_s22, 1 }
  0x23   : > { %1624 = vmatpush3.msk.msra.mxu1 %vm297_vm1, %v279_v2  ;;  %s1439_s30 = sadd.s32 %s1848_s21, %s1588_s27 }
  0x24   : > { %1633 = vmatprep.subr.mxu1 %v1866_v0  ;;  %1626 = vmatmul.mubr.msk.f32.vlgmr.msra.gmra.mrb[0].mxu1 %vm293_vm2, %v282_v3  ;;  %v1578_v3 = vld [vmem:[%s2181_s3 + $0x50] sm:$0xff]  ;;  %s1589_s8 = sshll.u32 %s1439_s30, 7 }
  0x25   : > { %1635 = vmatprep.mubr.msk.f32.mxu1 %vm1867_vm0, %v1866_v0 }
  0x26   : > { %449 = vrot.lane.b32.xlu1 %v280_v4, %s1869_s28  ;;  %289 = vrot.lane.b32.xlu0 %v280_v4, %s1870_s24  ;;  %s1877_s28 = smov 77   ;;  %s1878_s24 = smov 64  }
  0x2a   : > { %538 = vrot.lane.b32.xlu1 %v280_v4, %s1871_s29  ;;  %536 = vrot.lane.b32.xlu0 %v279_v2, %s1871_s29 }
  0x2e   : > { %630 = vrot.lane.b32.xlu1 %v280_v4, %s1872_s12  ;;  %628 = vrot.lane.b32.xlu0 %v279_v2, %s1872_s12 }
  0x32   : > { %722 = vrot.lane.b32.xlu1 %v280_v4, %s1873_s13  ;;  %720 = vrot.lane.b32.xlu0 %v279_v2, %s1873_s13  ;;  %s2125_s13 = scalar_lea.hbm %s2183_s5, %s1589_s8 }
  0x36   : > { %811 = vrot.lane.b32.xlu1 %v280_v4, %s1874_s14  ;;  %809 = vrot.lane.b32.xlu0 %v279_v2, %s1874_s14  ;;  %s1881_s14 = smov [#allocation2]  }
  0x3a   : > { %898 = vrot.lane.b32.xlu1 %v280_v4, %s1875_s15  ;;  %896 = vrot.lane.b32.xlu0 %v279_v2, %s1875_s15  ;;  %s1774_s15 = sshll.u32 %s1881_s14, 4  ;;  %s1775_s15 = int_to_ptr.vmem [resolvable:$false] %s1774_s15 }
  0x3e   : > { %990 = vrot.lane.b32.xlu1 %v280_v4, %s1876_s16  ;;  %988 = vrot.lane.b32.xlu0 %v279_v2, %s1876_s16  ;;  %s1776_s16 = scalar_lea.vmem %s1775_s15, 256 }
  0x42   : > { %1082 = vrot.lane.b32.xlu1 %v280_v4, %s1877_s28  ;;  %1080 = vrot.lane.b32.xlu0 %v279_v2, %s1877_s28 }
  0x46   : > { %1171 = vrot.lane.b32.xlu1 %v280_v4, %s1878_s24  ;;  %1169 = vrot.lane.b32.xlu0 %v279_v2, %s1878_s24 }
  0x4a   : > { %1255 = vrot.lane.b32.xlu1 %v280_v4, %s1879_s17  ;;  %1253 = vrot.lane.b32.xlu0 %v279_v2, %s1879_s17  ;;  %s260_s17 = sand.u32 1, %s1840_s19  }
  0x4b   : > { %s1428_s21 = scalar_lea.sflag [#allocation3], %s260_s17 }
  0x4e   : > { %1339 = vrot.lane.b32.xlu1 %v280_v4, %s1880_s26  ;;  %1337 = vrot.lane.b32.xlu0 %v279_v2, %s1880_s26  ;;  %s1544_s26 = sshll.u32 %s260_s17, 3 }
  0x4f   : > { %s262_s9 = scalar_lea.vmem [#allocation2], %s1544_s26 }
  0x50   : > { %s1443_s10 = sshll.u32 %s262_s9, 4  ;;  %s2127_s10 = int_to_ptr.vmem [resolvable:$true] %s1443_s10 }
  0x51   : > { %s1770_s22 = scalar_lea.vmem %s2127_s10, 128  ;;  %p1777_p4 = scmp.lt.s32.totalorder %s2127_s10, %s1775_s15 }
  0x52   : > { %1422 = vperm.xlu0 %1769, %v1419_v5   ;;  %p1771_p0 = scmp.ne.s32.totalorder %s2127_s10, %s1770_s22  ;;  %p1778_p5 = scmp.lt.s32.totalorder %s1776_s16, %s1770_s22 }
  0x54   : > { %p1772_p1 = pnand %p1771_p0, %p1963_p3  ;;  %p1779_p6 = por %p1778_p5, %p1777_p4 }
  0x56   : > { %p1773_p2 = pneg %p1772_p1 }
  0x58   : > { %p1780_p7 = pnand %p1779_p6, %p1773_p2 }
  0x94   : > { %v448_v10 = vpop.permute.xlu1 %447  ;;  %v288_v11 = vpop.permute.xlu0 %287 }
  0x98   : > { %v450_v15 = vpop.permute.xlu1 %449  ;;  %v290_v16 = vpop.permute.xlu0 %289 }
  0x99   : > { %v292_v18 = vsel %vm291_vm4, %v288_v11, %v290_v16  ;;  %v452_v19 = vsel %vm451_vm5, %v448_v10, %v450_v15  ;;  %vm1084_vm4 = vcmask 629760   ;;  %vm1079_vm5 = vcmp.eq.s32.totalorder %v1078_v53, 1  ;;  %v1584_v11 = vld [vmem:[%s2181_s3 + $0x60] sm:$0xff] }
  0x9a   : > { %1619 = vmatpush3.msk.msra.mxu0 %vm297_vm1, %v292_v18 }
  0x9b   : > { %1628 = vmatprep.subr.mxu0 %v1866_v0  ;;  %1621 = vmatmul.mubr.msk.f32.vlgmr.msra.gmra.mrb[0].mxu0 %vm293_vm2, %v1549_v17 }
  0x9c   : > { %v539_v22 = vpop.permute.xlu1 %538  ;;  %1629 = vmatpush3.msk.msra.mxu0 %vm297_vm1, %v452_v19  ;;  %v537_v23 = vpop.permute.xlu0 %536  ;;  %1630 = vmatprep.mubr.msk.f32.mxu0 %vm1867_vm0, %v1866_v0 }
  0x9d   : > { %v541_v25 = vsel %vm540_vm6, %v537_v23, %v539_v22  ;;  %1638 = vmatprep.subr.mxu0 %v1866_v0  ;;  %vm1173_vm6 = vcmask 523264  }
  0x9e   : > { %v543_v27 = vsel %vm535_vm7, %v541_v25, 0.0  ;;  %vm1257_vm7 = vcmask 392192  }
  0x9f   : > { %1634 = vmatpush3.msk.msra.mxu1 %vm297_vm1, %v543_v27  ;;  %1631 = vmatmul.mubr.msk.f32.vlgmr.msra.gmra.mrb[2].mxu0 %vm293_vm2, %v1554_v24 }
  0xa0   : > { %v631_v29 = vpop.permute.xlu1 %630  ;;  %v629_v30 = vpop.permute.xlu0 %628  ;;  %1643 = vmatprep.subr.mxu1 %v1866_v0  ;;  %1636 = vmatmul.mubr.msk.f32.vlgmr.msra.gmra.mrb[2].mxu1 %vm293_vm2, %v1557_v26 }
  0xa1   : > { %v633_v31 = vsel %vm632_vm8, %v629_v30, %v631_v29  ;;  %1640 = vmatprep.mubr.msk.f32.mxu0 %vm1867_vm0, %v1866_v0  ;;  %1645 = vmatprep.mubr.msk.f32.mxu1 %vm1867_vm0, %v1866_v0  ;;  %vm1341_vm8 = vcmask 261120  }
  0xa2   : > { %v635_v33 = vsel %vm627_vm9, %v633_v31, 0.0 }
  0xa3   : > { %1639 = vmatpush3.msk.msra.mxu0 %vm297_vm1, %v635_v33 }
  0xa4   : > { %v723_v35 = vpop.permute.xlu1 %722  ;;  %v721_v36 = vpop.permute.xlu0 %720  ;;  %1648 = vmatprep.subr.mxu0 %v1866_v0  ;;  %1641 = vmatmul.mubr.msk.f32.vlgmr.msra.gmra.mrb[4].mxu0 %vm293_vm2, %v1560_v32 }
  0xa5   : > { %v725_v37 = vsel %vm724_vm10, %v721_v36, %v723_v35  ;;  %1650 = vmatprep.mubr.msk.f32.mxu0 %vm1867_vm0, %v1866_v0 }
  0xa6   : > { %v727_v39 = vsel %vm719_vm11, %v725_v37, 0.0 }
  0xa7   : > { %1644 = vmatpush3.msk.msra.mxu1 %vm297_vm1, %v727_v39 }
  0xa8   : > { %v812_v42 = vpop.permute.xlu1 %811  ;;  %v810_v43 = vpop.permute.xlu0 %809  ;;  %1653 = vmatprep.subr.mxu1 %v1866_v0  ;;  %1646 = vmatmul.mubr.msk.f32.vlgmr.msra.gmra.mrb[4].mxu1 %vm293_vm2, %v1563_v38 }
  0xa9   : > { %v814_v45 = vsel %vm813_vm12, %v810_v43, %v812_v42  ;;  %1655 = vmatprep.mubr.msk.f32.mxu1 %vm1867_vm0, %v1866_v0 }
  0xaa   : > { %1649 = vmatpush3.msk.msra.mxu0 %vm297_vm1, %v814_v45 }
  0xab   : > { %1658 = vmatprep.subr.mxu0 %v1866_v0  ;;  %1651 = vmatmul.mubr.msk.f32.vlgmr.msra.gmra.mrb[6].mxu0 %vm293_vm2, %v1566_v44 }
  0xac   : > { %v899_v48 = vpop.permute.xlu1 %898  ;;  %v897_v49 = vpop.permute.xlu0 %896  ;;  %1660 = vmatprep.mubr.msk.f32.mxu0 %vm1867_vm0, %v1866_v0 }
  0xad   : > { %v901_v50 = vsel %vm900_vm13, %v897_v49, %v899_v48 }
  0xae   : > { %v903_v52 = vsel %vm895_vm14, %v901_v50, 0.0 }
  0xaf   : > { %1654 = vmatpush3.msk.msra.mxu1 %vm297_vm1, %v903_v52 }
  0xb0   : > { %v991_v54 = vpop.permute.xlu1 %990  ;;  %v989_v55 = vpop.permute.xlu0 %988  ;;  %1663 = vmatprep.subr.mxu1 %v1866_v0  ;;  %1656 = vmatmul.mubr.msk.f32.vlgmr.msra.gmra.mrb[6].mxu1 %vm293_vm2, %v1569_v51 }
  0xb1   : > { %v993_v56 = vsel %vm992_vm15, %v989_v55, %v991_v54  ;;  %1665 = vmatprep.mubr.msk.f32.mxu1 %vm1867_vm0, %v1866_v0 }
  0xb2   : > { %v995_v58 = vsel %vm987_vm3, %v993_v56, 0.0 }
  0xb3   : > { %1659 = vmatpush3.msk.msra.mxu0 %vm297_vm1, %v995_v58 }
  0xb4   : > { %v1083_v59 = vpop.permute.xlu1 %1082  ;;  %v1081_v60 = vpop.permute.xlu0 %1080  ;;  %1668 = vmatprep.subr.mxu0 %v1866_v0  ;;  %1661 = vmatmul.mubr.msk.f32.vlgmr.msra.gmra.mrb[8].mxu0 %vm293_vm2, %v1572_v57 }
  0xb5   : > { %v1085_v61 = vsel %vm1084_vm4, %v1081_v60, %v1083_v59  ;;  %1670 = vmatprep.mubr.msk.f32.mxu0 %vm1867_vm0, %v1866_v0 }
  0xb6   : > { %v1087_v63 = vsel %vm1079_vm5, %v1085_v61, 0.0 }
  0xb7   : > { %1664 = vmatpush3.msk.msra.mxu1 %vm297_vm1, %v1087_v63 }
  0xb8   : > { %v1172_v1 = vpop.permute.xlu1 %1171  ;;  %v1170_v2 = vpop.permute.xlu0 %1169  ;;  %1673 = vmatprep.subr.mxu1 %v1866_v0  ;;  %1666 = vmatmul.mubr.msk.f32.vlgmr.msra.gmra.mrb[8].mxu1 %vm293_vm2, %v1575_v62 }
  0xb9   : > { %v1174_v4 = vsel %vm1173_vm6, %v1170_v2, %v1172_v1  ;;  %1675 = vmatprep.mubr.msk.f32.mxu1 %vm1867_vm0, %v1866_v0 }
  0xba   : > { %1669 = vmatpush3.msk.msra.mxu0 %vm297_vm1, %v1174_v4 }
  0xbb   : > { %1671 = vmatmul.mubr.msk.f32.vlgmr.msra.gmra.mrb[10].mxu0 %vm293_vm2, %v1578_v3  ;;  %1678 = vmatprep.subr.mxu0 %v1866_v0 }
  0xbc   : > { %v1256_v5 = vpop.permute.xlu1 %1255  ;;  %v1254_v6 = vpop.permute.xlu0 %1253  ;;  %1680 = vmatprep.mubr.msk.f32.mxu0 %vm1867_vm0, %v1866_v0 }
  0xbd   : > { %v1258_v8 = vsel %vm1257_vm7, %v1254_v6, %v1256_v5 }
  0xbe   : > { %1674 = vmatpush3.msk.msra.mxu1 %vm297_vm1, %v1258_v8 }
  0xbf   : > { %1676 = vmatmul.mubr.msk.f32.vlgmr.msra.gmra.mrb[10].mxu1 %vm293_vm2, %v1581_v7 }
  0xc0   : > { %v1340_v9 = vpop.permute.xlu1 %1339  ;;  %v1338_v10 = vpop.permute.xlu0 %1337 }
  0xc1   : > { %v1342_v12 = vsel %vm1341_vm8, %v1338_v10, %v1340_v9 }
  0xc2   : > { %1679 = vmatpush3.msk.msra.mxu0 %vm297_vm1, %v1342_v12 }
  0xc3   : > { %1681 = vmatmul.mubr.msk.f32.vlgmr.msra.gmra.mrb[12].mxu0 %vm293_vm2, %v1584_v11 }
  0xd1   : > { %v1423_v48 = vpop.permute.xlu0 %1422 }
  0xf7   : > { %v441_v13 = vpop.f32.mrb[0].mxu1 }
  0xf8   : > { %v1627_v14 = vpop.f32.mrb[1].mxu1 }
 0x16e   : > { %v366_v0 = vpop.f32.mrb[0].mxu0 }
 0x16f   : > { %v1622_v15 = vpop.f32.mrb[1].mxu0  ;;  %v442_v16 = vadd.f32 %v441_v13, %v366_v0 }
 0x172   : > { %v524_v17 = vpop.f32.mrb[2].mxu0 }
 0x173   : > { %v528_v18 = vadd.f32 %v524_v17, %v442_v16  ;;  %v1632_v19 = vpop.f32.mrb[3].mxu0  ;;  %v618_v20 = vpop.f32.mrb[2].mxu1 }
 0x174   : > { %v1637_v21 = vpop.f32.mrb[3].mxu1 }
 0x175   : > { %v622_v22 = vadd.f32 %v618_v20, %v528_v18 }
 0x177   : > { %v710_v23 = vpop.f32.mrb[4].mxu0 }
 0x178   : > { %v714_v24 = vadd.f32 %v710_v23, %v622_v22  ;;  %v1642_v25 = vpop.f32.mrb[5].mxu0 }
 0x17b   : > { %v802_v26 = vpop.f32.mrb[4].mxu1 }
 0x17c   : > { %v806_v27 = vadd.f32 %v802_v26, %v714_v24  ;;  %v1647_v28 = vpop.f32.mrb[5].mxu1 }
 0x17e   : > { %v886_v29 = vpop.f32.mrb[6].mxu0 }
 0x17f   : > { %v890_v30 = vadd.f32 %v886_v29, %v806_v27  ;;  %v1652_v31 = vpop.f32.mrb[7].mxu0 }
 0x183   : > { %v978_v32 = vpop.f32.mrb[6].mxu1 }
 0x184   : > { %v982_v33 = vadd.f32 %v978_v32, %v890_v30  ;;  %v1657_v34 = vpop.f32.mrb[7].mxu1 }
 0x187   : > { %v1070_v35 = vpop.f32.mrb[8].mxu0 }
 0x188   : > { %v1074_v36 = vadd.f32 %v1070_v35, %v982_v33  ;;  %v1662_v37 = vpop.f32.mrb[9].mxu0 }
 0x18b   : > { %v1162_v38 = vpop.f32.mrb[8].mxu1 }
 0x18c   : > { %v1166_v39 = vadd.f32 %v1162_v38, %v1074_v36  ;;  %v1667_v40 = vpop.f32.mrb[9].mxu1 }
 0x18e   : > { %v1246_v41 = vpop.f32.mrb[10].mxu0 }
 0x18f   : > { %v1250_v42 = vadd.f32 %v1246_v41, %v1166_v39  ;;  %v1672_v43 = vpop.f32.mrb[11].mxu0 }
 0x192   : > { %v1330_v44 = vpop.f32.mrb[10].mxu1 }
 0x193   : > { %v1334_v45 = vadd.f32 %v1330_v44, %v1250_v42  ;;  %v1677_v46 = vpop.f32.mrb[11].mxu1 }
 0x196   : > { %v1414_v47 = vpop.f32.mrb[12].mxu0 }
 0x197   : > { %v1418_v49 = vadd.f32 %v1414_v47, %v1334_v45  ;;  %v1682_v50 = vpop.f32.mrb[13].mxu0 }
 0x199   : > { %v1425_v51 = vadd.f32 %v1423_v48, %v1418_v49 }
 0x19b   : > { %1426 = vst [vmem:[%s262_s9] sm:$0xff] %v1425_v51 }
 0x19c   : > { %1783 = shalt.err (!%p1780_p7)
}
 0x19d   : > { %s1784_s28 = scalar_lea.hbm %s2125_s13, 128  ;;  %s1788_s26 = scalar_lea.hbm %s2183_s5, 512 }
 0x19e   : > { %p1785_p9 = scmp.ne.s32.totalorder %s2125_s13, %s1784_s28  ;;  %p1789_p12 = scmp.lt.u32.totalorder %s2125_s13, %s2183_s5 }
 0x19f   : > { %p1790_p13 = scmp.lt.u32.totalorder %s1788_s26, %s1784_s28  ;;  %p1792_p1 = scmp.lt.u32.totalorder %s1784_s28, %s2125_s13 }
 0x1a0   : > { %p1786_p10 = pnand %p1785_p9, %p1963_p3 }
 0x1a1   : > { %p1791_p0 = por %p1790_p13, %p1789_p12 }
 0x1a2   : > { %p1787_p11 = pneg %p1786_p10 }
 0x1a3   : > { %p1793_p2 = por %p1792_p1, %p1791_p0 }
 0x1a5   : > { %p1794_p4 = pnand %p1793_p2, %p1787_p11 }
 0x1a7   : > { %1797 = shalt.err (!%p1794_p4)
}
 0x1a8   : > { %1683 = dma.vmem_to_hbm [thread:$0]  (%p1963_p3), %s2127_s10, 128, %s2125_s13, %s1428_s21  }
 0x1a9 PF: > { %p1689_p5 = scmp.ge.s32.totalorder %s1864_s25, 2  ;;  %s1455_s8 = sand.u32 1, %s1836_s18  }
 0x1aa   : > { %s1456_s9 = scalar_lea.sflag [#allocation3], %s1455_s8 }
 0x1ab   : > { %p1686_p6 = pnand %p1689_p5, %p1972_p8 }
 0x1ad   : > { %1831 = dma.done.wait (!%p1686_p6), %s1456_s9, 128  }
 0x1ae   : > { %1833 = vsyncadd (!%p1686_p6), %s1456_s9, 4294967168  ;;  %s18_s25 = sadd.s32 1, %s1864_s25   ;;  %s2192_s22 = sld [smem:[#allocation5_spill]] }
 0x1af   : > { %p15_p7 = scmp.ge.s32.totalorder %s18_s25, 6   ;;  %s2193_s6 = sld [smem:[#allocation6_spill]] }
 0x1b0   : > { %s2194_s24 = sld [smem:[#allocation7_spill]]  ;;  %s2195_s18 = smov %s1840_s19 }
 0x1b1   : > { %s2196_s19 = smov %s1844_s20  ;;  %s2197_s20 = smov %s1981_s11 }
 0x1b2   : > { %s2198_s21 = smov %s1856_s23  ;;  %17 = sbr.rel (!%p15_p7) target bundleno = 5 (0x5), region = 90 }
 0x1b5   : > { %s2199_s23 = smov %s2193_s6 }
 0x1b9   :  { %1461 = vsyncpa [#allocation3], 1 }
 0x1ba   :  { %1463 = vsyncpa [#allocation3 + $0x1], 1 }

</bundles_post_ra>
